<compile_context>
chip_gen: v7x
topology: tpu7x:2x2x1
jax: 0.10.0
libtpu: 0.0.40
codegen_flags: <defaults>
</compile_context>

<pallas_src>
import jax
import jax.numpy as jnp
from jax.experimental import pallas as pl
from jax.experimental.pallas import tpu as pltpu


def _round_up(x, m):
    return (x + m - 1) // m * m


def _critic_kernel(x_ref, w1_ref, b1_ref, w2_ref, b2_ref, w3_ref, b3_ref, q_ref):
    # Weights are tiny and VMEM-resident; load once per grid step.
    w1 = w1_ref[...]                                    # (fc1, ds+na) bf16
    w2 = w2_ref[...]                                    # (fc2, fc1)   bf16

    # fc1: (fc1, ds+na) @ (ds+na, TB) -> (fc1, TB); bf16 MXU operands, f32 accumulate.
    h1 = jnp.dot(w1, x_ref[...], preferred_element_type=jnp.float32)
    h1 = jnp.maximum(h1 + b1_ref[...], 0.0)             # f32 VPU, full-lane vregs

    # fc2: (fc2, fc1) @ (fc1, TB) -> (fc2, TB)
    h2 = jnp.dot(w2, h1.astype(w2.dtype), preferred_element_type=jnp.float32)
    h2 = jnp.maximum(h2 + b2_ref[...], 0.0)             # (fc2, TB) f32

    # q1 (N=1): VPU multiply + 32-sublane reduce -> lane-dense (1, TB) row (no relayout).
    q_ref[...] = jnp.sum(h2 * w3_ref[...], axis=0, keepdims=True) + b3_ref[0, 0]


def critic_forward(state, action, prepared, *, block_b=2048):
    """Pallas implementation of CriticNetwork.forward(state, action) -> [B, 1]."""
    w1_c, b1_col, w2_c, b2_col, w3_col, b3_s = prepared

    B, ds = state.shape
    da = action.shape[1]
    din = ds + da

    # Balanced batch tiles (multiple of 128); force >=2 grid steps for large batches so the
    # "parallel" batch axis can shard across v7x's two TensorCores.
    n_tiles = pl.cdiv(B, block_b)
    if B >= 256:
        n_tiles = max(n_tiles, 2)
    tb = _round_up(pl.cdiv(B, n_tiles), 128)
    grid_b = pl.cdiv(B, tb)
    b_pad = grid_b * tb

    # Fused concat + bf16 cast + batch-on-lanes transpose (cheap XLA prep, fuses upstream).
    x = jnp.concatenate([state, action], axis=1).astype(jnp.bfloat16)   # (B, din)
    if b_pad != B:
        x = jnp.pad(x, ((0, b_pad - B), (0, 0)))
    x_t = x.T                                                           # (din, b_pad)

    resident = lambda arr: pl.BlockSpec(arr.shape, lambda i: (0, 0))

    q_row = pl.pallas_call(
        _critic_kernel,
        out_shape=jax.ShapeDtypeStruct((1, b_pad), jnp.float32),
        grid=(grid_b,),
        in_specs=[
            pl.BlockSpec((din, tb), lambda i: (0, i)),              # xT batch tile
            resident(w1_c), resident(b1_col),                       # fc1 params (resident)
            resident(w2_c), resident(b2_col),                       # fc2 params (resident)
            resident(w3_col),                                       # q1 weight col (resident)
            pl.BlockSpec(memory_space=pltpu.MemorySpace.SMEM),      # q1 bias scalar
        ],
        out_specs=pl.BlockSpec((1, tb), lambda i: (0, i)),          # lane-dense q row
        compiler_params=pltpu.CompilerParams(
            dimension_semantics=("parallel",),
        ),
    )(x_t, w1_c, b1_col, w2_c, b2_col, w3_col, b3_s)

    return q_row[0, :B].reshape(B, 1)


def init_params(key, input_dim, n_actions, fc1_dims, fc2_dims):
    """Deterministic init mimicking nn.Linear default (U(-1/sqrt(fan_in), 1/sqrt(fan_in)))."""
    def linear_init(k, out_f, in_f):
        kw, kb = jax.random.split(k)
        bound = 1.0 / jnp.sqrt(in_f)
        w = jax.random.uniform(kw, (out_f, in_f), jnp.float32, -bound, bound)
        b = jax.random.uniform(kb, (out_f,), jnp.float32, -bound, bound)
        return w, b

    k1, k2, k3 = jax.random.split(key, 3)
    w1, b1 = linear_init(k1, fc1_dims, input_dim + n_actions)
    w2, b2 = linear_init(k2, fc2_dims, fc1_dims)
    w3, b3 = linear_init(k3, 1, fc2_dims)
    return (w1, b1, w2, b2, w3, b3)


def prepare_params(params, compute_dtype=jnp.bfloat16):
    """One-time (off the hot path) conversion to kernel layout: PyTorch [out, in] weights
    are used directly for the batch-on-lanes dataflow (just cast MXU weights to bf16);
    biases and the VPU-side q1 weight become f32 columns; b3 is a (1,1) SMEM scalar."""
    w1, b1, w2, b2, w3, b3 = params
    w1_c = w1.astype(compute_dtype)                    # (fc1, ds+na)
    w2_c = w2.astype(compute_dtype)                    # (fc2, fc1)
    b1_col = b1.reshape(-1, 1).astype(jnp.float32)     # (fc1, 1)
    b2_col = b2.reshape(-1, 1).astype(jnp.float32)     # (fc2, 1)
    w3_col = w3.reshape(-1, 1).astype(jnp.float32)     # (fc2, 1)  VPU path, keep f32
    b3_s = b3.reshape(1, 1).astype(jnp.float32)        # (1, 1)    SMEM scalar
    return (w1_c, b1_col, w2_c, b2_col, w3_col, b3_s)


def reference_forward(state, action, params):
    """Pure-JAX f32 reference (exact PyTorch semantics) for correctness checking."""
    w1, b1, w2, b2, w3, b3 = params
    x = jnp.concatenate([state, action], axis=1)
    h1 = jnp.maximum(x @ w1.T + b1, 0.0)
    h2 = jnp.maximum(h1 @ w2.T + b2, 0.0)
    return h2 @ w3.T + b3


if __name__ == "__main__":
    # Small shapes consistent with the module: input_dims=(8,), n_actions=4,
    # fc1_dims=32, fc2_dims=32, batch=2.
    batch, input_dim, n_actions, fc1_dims, fc2_dims = 2, 8, 4, 32, 32

    key = jax.random.PRNGKey(0)
    kp, ks, ka = jax.random.split(key, 3)

    params = init_params(kp, input_dim, n_actions, fc1_dims, fc2_dims)
    state = jax.random.normal(ks, (batch, input_dim), jnp.float32)
    action = jax.random.normal(ka, (batch, n_actions), jnp.float32)

    prepared = prepare_params(params)   # cast / reshape hoisted off the hot path
    fwd = jax.jit(critic_forward)

    q = jax.block_until_ready(fwd(state, action, prepared))
    q_ref = reference_forward(state, action, params)

    assert q.shape == (batch, 1)
    # bf16 MXU operands with f32 accumulation -> small numeric drift vs the pure-f32 reference.
    assert jnp.allclose(q, q_ref, atol=5e-2, rtol=5e-2), (q, q_ref)

    print("KERNEL_OK")
</pallas_src>

<mosaic_0001>
module attributes {stable_mosaic.version = 11 : i64} {
  func.func @_critic_kernel(%arg0: i32, %arg1: memref<12x128xbf16, #tpu.memory_space<vmem>>, %arg2: memref<32x12xbf16, #tpu.memory_space<vmem>>, %arg3: memref<32x1xf32, #tpu.memory_space<vmem>>, %arg4: memref<32x32xbf16, #tpu.memory_space<vmem>>, %arg5: memref<32x1xf32, #tpu.memory_space<vmem>>, %arg6: memref<32x1xf32, #tpu.memory_space<vmem>>, %arg7: memref<1x1xf32, #tpu.memory_space<smem>>, %arg8: memref<1x128xf32, #tpu.memory_space<vmem>>) attributes {dimension_semantics = [#tpu.dimension_semantics<parallel>], iteration_bounds = array<i64: 1>, scalar_prefetch = 0 : i64, scratch_operands = 0 : i64, tpu.core_type = #tpu.core_type<tc>, window_params = [{transform_indices = @transform_0, window_bounds = array<i64: 12, 128>}, {pipeline_mode = #tpu.pipeline_mode<synchronous>, transform_indices = @transform_1, window_bounds = array<i64: 32, 12>}, {pipeline_mode = #tpu.pipeline_mode<synchronous>, transform_indices = @transform_2, window_bounds = array<i64: 32, 1>}, {pipeline_mode = #tpu.pipeline_mode<synchronous>, transform_indices = @transform_3, window_bounds = array<i64: 32, 32>}, {pipeline_mode = #tpu.pipeline_mode<synchronous>, transform_indices = @transform_4, window_bounds = array<i64: 32, 1>}, {pipeline_mode = #tpu.pipeline_mode<synchronous>, transform_indices = @transform_5, window_bounds = array<i64: 32, 1>}, {transform_indices = @transform_6, window_bounds = array<i64: 1, 1>}, {transform_indices = @transform_7, window_bounds = array<i64: 1, 128>}]} {
    %c0 = arith.constant 0 : index
    %c0_0 = arith.constant 0 : index
    %0 = vector.load %arg2[%c0, %c0_0] : memref<32x12xbf16, #tpu.memory_space<vmem>>, vector<32x12xbf16>
    %c0_1 = arith.constant 0 : index
    %c0_2 = arith.constant 0 : index
    %1 = vector.load %arg4[%c0_1, %c0_2] : memref<32x32xbf16, #tpu.memory_space<vmem>>, vector<32x32xbf16>
    %c0_3 = arith.constant 0 : index
    %c0_4 = arith.constant 0 : index
    %2 = vector.load %arg1[%c0_3, %c0_4] : memref<12x128xbf16, #tpu.memory_space<vmem>>, vector<12x128xbf16>
    %cst = arith.constant dense<0.000000e+00> : vector<32x128xf32>
    %3 = tpu.matmul %0, %2, %cst {dimension_numbers = #tpu.dot_dimension_numbers<[1], [0], [0], [1], [0, 0, 1, 1], [], []>} : vector<32x12xbf16>, vector<12x128xbf16>, vector<32x128xf32> -> vector<32x128xf32>
    %c0_5 = arith.constant 0 : index
    %c0_6 = arith.constant 0 : index
    %4 = vector.load %arg3[%c0_5, %c0_6] : memref<32x1xf32, #tpu.memory_space<vmem>>, vector<32x1xf32>
    %5 = vector.broadcast %4 : vector<32x1xf32> to vector<32x128xf32>
    %6 = arith.addf %3, %5 : vector<32x128xf32>
    %cst_7 = arith.constant 0.000000e+00 : f32
    %7 = vector.broadcast %cst_7 : f32 to vector<32x128xf32>
    %8 = arith.maximumf %6, %7 : vector<32x128xf32>
    %9 = arith.truncf %8 : vector<32x128xf32> to vector<32x128xbf16>
    %cst_8 = arith.constant dense<0.000000e+00> : vector<32x128xf32>
    %10 = tpu.matmul %1, %9, %cst_8 {dimension_numbers = #tpu.dot_dimension_numbers<[1], [0], [0], [1], [0, 0, 1, 1], [], []>} : vector<32x32xbf16>, vector<32x128xbf16>, vector<32x128xf32> -> vector<32x128xf32>
    %c0_9 = arith.constant 0 : index
    %c0_10 = arith.constant 0 : index
    %11 = vector.load %arg5[%c0_9, %c0_10] : memref<32x1xf32, #tpu.memory_space<vmem>>, vector<32x1xf32>
    %12 = vector.broadcast %11 : vector<32x1xf32> to vector<32x128xf32>
    %13 = arith.addf %10, %12 : vector<32x128xf32>
    %cst_11 = arith.constant 0.000000e+00 : f32
    %14 = vector.broadcast %cst_11 : f32 to vector<32x128xf32>
    %15 = arith.maximumf %13, %14 : vector<32x128xf32>
    %c0_12 = arith.constant 0 : index
    %c0_13 = arith.constant 0 : index
    %16 = vector.load %arg6[%c0_12, %c0_13] : memref<32x1xf32, #tpu.memory_space<vmem>>, vector<32x1xf32>
    %17 = vector.broadcast %16 : vector<32x1xf32> to vector<32x128xf32>
    %18 = arith.mulf %15, %17 : vector<32x128xf32>
    %cst_14 = arith.constant dense<0.000000e+00> : vector<128xf32>
    %19 = vector.multi_reduction <add>, %18, %cst_14 [0] : vector<32x128xf32> to vector<128xf32>
    %20 = vector.shape_cast %19 : vector<128xf32> to vector<1x128xf32>
    %c0_15 = arith.constant 0 : index
    %c0_16 = arith.constant 0 : index
    %21 = memref.load %arg7[%c0_15, %c0_16] : memref<1x1xf32, #tpu.memory_space<smem>>
    %22 = vector.broadcast %21 : f32 to vector<1x128xf32>
    %23 = arith.addf %20, %22 : vector<1x128xf32>
    %c0_17 = arith.constant 0 : index
    %c0_18 = arith.constant 0 : index
    %24 = vector.load %arg8[%c0_17, %c0_18] : memref<1x128xf32, #tpu.memory_space<vmem>>, vector<1x128xf32>
    tpu.vector_store %arg8[%c0_17, %c0_18], %23 {strides = array<i32>} : memref<1x128xf32, #tpu.memory_space<vmem>>, vector<1x128xf32>,
    return
  }
  func.func @transform_0(%arg0: i32) -> (i32, i32) {
    %c0_i32 = arith.constant 0 : i32
    %c0_i32_0 = arith.constant 0 : i32
    return %c0_i32, %arg0 : i32, i32
  }
  func.func @transform_1(%arg0: i32) -> (i32, i32) {
    %c0_i32 = arith.constant 0 : i32
    %c0_i32_0 = arith.constant 0 : i32
    %c0_i32_1 = arith.constant 0 : i32
    return %c0_i32, %c0_i32_0 : i32, i32
  }
  func.func @transform_2(%arg0: i32) -> (i32, i32) {
    %c0_i32 = arith.constant 0 : i32
    %c0_i32_0 = arith.constant 0 : i32
    %c0_i32_1 = arith.constant 0 : i32
    return %c0_i32, %c0_i32_0 : i32, i32
  }
  func.func @transform_3(%arg0: i32) -> (i32, i32) {
    %c0_i32 = arith.constant 0 : i32
    %c0_i32_0 = arith.constant 0 : i32
    %c0_i32_1 = arith.constant 0 : i32
    return %c0_i32, %c0_i32_0 : i32, i32
  }
  func.func @transform_4(%arg0: i32) -> (i32, i32) {
    %c0_i32 = arith.constant 0 : i32
    %c0_i32_0 = arith.constant 0 : i32
    %c0_i32_1 = arith.constant 0 : i32
    return %c0_i32, %c0_i32_0 : i32, i32
  }
  func.func @transform_5(%arg0: i32) -> (i32, i32) {
    %c0_i32 = arith.constant 0 : i32
    %c0_i32_0 = arith.constant 0 : i32
    %c0_i32_1 = arith.constant 0 : i32
    return %c0_i32, %c0_i32_0 : i32, i32
  }
  func.func @transform_6(%arg0: i32) -> (i32, i32) {
    %c0_i32 = arith.constant 0 : i32
    %c0_i32_0 = arith.constant 0 : i32
    %c0_i32_1 = arith.constant 0 : i32
    return %c0_i32, %c0_i32_0 : i32, i32
  }
  func.func @transform_7(%arg0: i32) -> (i32, i32) {
    %c0_i32 = arith.constant 0 : i32
    %c0_i32_0 = arith.constant 0 : i32
    return %c0_i32, %arg0 : i32, i32
  }
}

</mosaic_0001>

<bundles_post_ra>
// kernel: critic_forward.1
= control target key start
LH: loop header
LB: loop body
LE: loop exit
PB: predicated region body
PF: predicated region fallthrough
CT: control target
= control target key end

     0   :  { %vm84_vm0 = vcmask 1045504   ;;  %vm77_vm1 = vcmask 97280   ;;  %v321_v1 = vmov 0   ;;  %vm177_vm2 = vcmask 261120   ;;  %s423_s0 = inlined_call_operand.vmem [shape: bf16[12,128], index: 0, kind: input, shape index: {}]   ;;  %s424_s1 = inlined_call_operand.vmem [shape: bf16[32,12], index: 1, kind: input, shape index: {}]   ;;  %s425_s2 = inlined_call_operand.vmem [shape: f32[32,1], index: 2, kind: input, shape index: {}]   ;;  %s426_s4 = inlined_call_operand.vmem [shape: f32[32,1], index: 4, kind: input, shape index: {}]   ;;  %s427_s5 = inlined_call_operand.vmem [shape: f32[32,1], index: 5, kind: input, shape index: {}]   ;;  %s428_s3 = inlined_call_operand.vmem [shape: bf16[32,32], index: 3, kind: input, shape index: {}]   ;;  %s429_s6 = inlined_call_operand.<no memory space> [shape: f32[1,1], index: 6, kind: input, shape index: {}]   ;;  %s430_s7 = inlined_call_operand.vmem [shape: f32[1,128], index: 7, kind: output, shape index: {}]  }
   0x1   :  { %v316_v0 = vld [vmem:[%s423_s0] sm:$0x3f]   ;;  %314 = vset.pattern.permute.xlu0 %v321_v1  ;;  %315 = vset.pattern.permute.xlu1 %v321_v1  ;;  %v318_v4 = vld [vmem:[%s424_s1 + $0x8] sm:$0xff]   ;;  %v40_v6 = vld [vmem:[%s425_s2 + $0x10] sm:$0xff] }
   0x2   :  { %v317_v2 = vld [vmem:[%s424_s1] sm:$0xff]   ;;  %312 = vmatprep.subr.msk.bf16.mxu0 %vm84_vm0, %v316_v0  ;;  %v86_v3 = vsel %vm84_vm0, %v316_v0, 0  ;;  %54 = vperm.xlu1 %315, %v40_v6   ;;  %v39_v7 = vld [vmem:[%s425_s2 + $0x8] sm:$0xff]  ;;  %v41_v8 = vld [vmem:[%s425_s2 + $0x18] sm:$0xff] }
   0x3   :  { %299 = vmatpush3.bf16.msra.mxu0 %v86_v3  ;;  %300 = vmatprep.mubr.msk.bf16.mxu0 %vm77_vm1, %v317_v2  ;;  %v38_v5 = vld [vmem:[%s425_s2] sm:$0xff]  ;;  %v144_v10 = vld [vmem:[%s426_s4 + $0x8] sm:$0xff]  ;;  %v145_v11 = vld [vmem:[%s426_s4 + $0x10] sm:$0xff] }
   0x4   :  { %44 = vperm.xlu0 %314, %v38_v5   ;;  %v143_v9 = vld [vmem:[%s426_s4] sm:$0xff]  ;;  %v146_v12 = vld [vmem:[%s426_s4 + $0x18] sm:$0xff]  ;;  %v238_v14 = vld [vmem:[%s427_s5 + $0x8] sm:$0xff]  ;;  %v275_v5 = vstv %s429_s6 }
   0x5   :  { %v237_v13 = vld [vmem:[%s427_s5] sm:$0xff]  ;;  %v239_v15 = vld [vmem:[%s427_s5 + $0x10] sm:$0xff]  ;;  %v240_v16 = vld [vmem:[%s427_s5 + $0x18] sm:$0xff] }
   0x6   :  { %301 = vmatmul.mubr.msk.bf16.vlgmr.msra.gmra.mrb[0].mxu0 %vm77_vm1, %v318_v4  ;;  %59 = vperm.xlu1 %315, %v41_v8   ;;  %v319_v17 = vld [vmem:[%s428_s3] sm:$0xff]   ;;  %v320_v36 = vld [vmem:[%s428_s3 + $0x8] sm:$0xff]  }
   0x7   :  { %308 = vmatprep.mubr.msk.bf16.mxu1 %vm177_vm2, %v319_v17 }
   0x8   :  { %49 = vperm.xlu0 %314, %v39_v7  }
   0xa   :  { %154 = vperm.xlu1 %315, %v144_v10  }
   0xc   :  { %149 = vperm.xlu0 %314, %v143_v9  }
   0xe   :  { %164 = vperm.xlu1 %315, %v146_v12  }
  0x10   :  { %159 = vperm.xlu0 %314, %v145_v11  }
  0x12   :  { %248 = vperm.xlu1 %315, %v238_v14  }
  0x14   :  { %243 = vperm.xlu0 %314, %v237_v13  }
  0x16   :  { %258 = vperm.xlu1 %315, %v240_v16  }
  0x18   :  { %253 = vperm.xlu0 %314, %v239_v15  }
  0x81   :  { %v55_v18 = vpop.permute.xlu1 %54 }
  0x83   :  { %v45_v19 = vpop.permute.xlu0 %44 }
  0x85   :  { %v60_v23 = vpop.permute.xlu1 %59 }
  0x87   :  { %v50_v26 = vpop.permute.xlu0 %49 }
  0x89   :  { %v155_v38 = vpop.permute.xlu1 %154 }
  0x8b   :  { %v150_v37 = vpop.permute.xlu0 %149 }
  0x8d   :  { %v165_v40 = vpop.permute.xlu1 %164 }
  0x8f   :  { %v160_v39 = vpop.permute.xlu0 %159 }
  0x91   :  { %v249_v51 = vpop.permute.xlu1 %248 }
  0x93   :  { %v244_v46 = vpop.permute.xlu0 %243 }
  0x95   :  { %v259_v60 = vpop.permute.xlu1 %258 }
  0x97   :  { %v254_v57 = vpop.permute.xlu0 %253 }
  0xd9   :  { %v302_v20 = vpop.f32.mrb[0].mxu0 }
  0xda   :  { %v131_v21 = vadd.f32 %v302_v20, %v55_v18  ;;  %v122_v22 = vpop.f32.mrb[1].mxu0 }
  0xdb   :  { %v123_v24 = vadd.f32 %v122_v22, %v45_v19  ;;  %v303_v25 = vpop.f32.mrb[2].mxu0 }
  0xdc   :  { %v134_v27 = vadd.f32 %v303_v25, %v60_v23  ;;  %v125_v28 = vpop.f32.mrb[3].mxu0  ;;  %v139_v30 = vmax.f32 %v131_v21, 0.0 }
  0xdd   :  { %v126_v29 = vadd.f32 %v125_v28, %v50_v26  ;;  %v137_v32 = vmax.f32 %v123_v24, 0.0 }
  0xde   :  { %v140_v31 = vmax.f32 %v134_v27, 0.0 }
  0xdf   :  { %v138_v33 = vmax.f32 %v126_v29, 0.0 }
  0xe0   :  { %v142_v34 = vpack.c.bf16 %v140_v31, %v139_v30 }
  0xe1   :  { %v141_v35 = vpack.c.bf16 %v138_v33, %v137_v32 }
  0xe3   :  { %304 = vmatprep.subr.bf16.mxu1 %v141_v35 }
  0xe4   :  { %305 = vmatpush3.bf16.msra.mxu1 %v141_v35 }
  0xe5   :  { %306 = vmatprep.subr.bf16.mxu1 %v142_v34 }
  0xe8   :  { %307 = vmatpush3.bf16.msra.mxu1 %v142_v34 }
  0xeb   :  { %309 = vmatmul.mubr.msk.bf16.vlgmr.msra.gmra.mrb[0].mxu1 %vm177_vm2, %v320_v36 }
 0x1be   :  { %v310_v41 = vpop.f32.mrb[0].mxu1 }
 0x1bf   :  { %v218_v42 = vpop.f32.mrb[1].mxu1  ;;  %v227_v43 = vadd.f32 %v310_v41, %v160_v39 }
 0x1c0   :  { %v219_v44 = vadd.f32 %v218_v42, %v150_v37  ;;  %v311_v45 = vpop.f32.mrb[2].mxu1 }
 0x1c1   :  { %v221_v47 = vpop.f32.mrb[3].mxu1  ;;  %v230_v49 = vadd.f32 %v311_v45, %v165_v40  ;;  %v235_v52 = vmax.f32 %v227_v43, 0.0 }
 0x1c2   :  { %v233_v48 = vmax.f32 %v219_v44, 0.0  ;;  %v222_v50 = vadd.f32 %v221_v47, %v155_v38 }
 0x1c3   :  { %v236_v55 = vmax.f32 %v230_v49, 0.0  ;;  %v263_v58 = vmul.f32 %v254_v57, %v235_v52 }
 0x1c4   :  { %v234_v53 = vmax.f32 %v222_v50, 0.0  ;;  %v261_v54 = vmul.f32 %v244_v46, %v233_v48 }
 0x1c5   :  { %v264_v61 = vmul.f32 %v259_v60, %v236_v55 }
 0x1c6   :  { %v262_v56 = vmul.f32 %v249_v51, %v234_v53 }
 0x1c8   :  { %v265_v59 = vadd.f32 %v262_v56, %v261_v54 }
 0x1ca   :  { %v266_v62 = vadd.f32 %v265_v59, %v263_v58 }
 0x1cc   :  { %v267_v63 = vadd.f32 %v266_v62, %v264_v61 }
 0x1ce   :  { %v268_v0 = vrot.slane %v267_v63, 4 }
 0x1d0   :  { %v269_v1 = vadd.f32 %v268_v0, %v267_v63 }
 0x1d2   :  { %v270_v2 = vrot.slane %v269_v1, 2 }
 0x1d4   :  { %v271_v3 = vadd.f32 %v270_v2, %v269_v1 }
 0x1d6   :  { %v272_v4 = vrot.slane %v271_v3, 1 }
 0x1d8   :  { %v273_v6 = vadd.f32 %v272_v4, %v271_v3 }
 0x1da   :  { %v276_v7 = vadd.f32 %v275_v5, %v273_v6 }
 0x1dc   :  { %277 = vst [vmem:[%s430_s7] sm:$0x1] %v276_v7 }

</bundles_post_ra>
